<compile_context>
chip_gen: v5e
topology: v5e:2x2
jax: 0.10.0
libtpu: 0.0.40
codegen_flags: <defaults>
</compile_context>

<pallas_src>
import functools

import jax
import jax.numpy as jnp
import numpy as np
from jax.experimental import pallas as pl
from jax.experimental.pallas import tpu as pltpu

_LANES = 128
_ACC_ROWS = 8                       # sublane rows kept in the accumulator block
_MAX_BLOCK_BYTES = 6 * 1024 * 1024  # per-input block cap (review: 4-8 MiB class)
_MAX_TILE_ROWS = 4096


def _pick_tile_rows(rows: int, chans: int, itemsize: int) -> int:
    """Largest spatial tile (in 128-lane rows) with a ~6 MiB per-input block.

    No divisibility requirement on `rows` -- the ragged last block is masked
    inside the kernel, so there is no fallback-to-8-rows cliff."""
    if rows <= _ACC_ROWS:
        return rows
    cap = max(_ACC_ROWS, _MAX_BLOCK_BYTES // (chans * _LANES * itemsize))
    cap = min(cap, _MAX_TILE_ROWS)
    t = min(rows, cap)
    return max(_ACC_ROWS, (t // _ACC_ROWS) * _ACC_ROWS)


def _partial_kernel(gen_ref, dst_ref, out_ref, *,
                    tile_rows: int, acc_rows: int, s_inner: int,
                    valid_pixels: int, need_mask: bool):
    """Accumulate per-(image, outer-chunk) partial sums into
    out_ref (1, 1, 3, acc_rows, 128):
       [0] sum(|gen-dst|), [1] sum(mask), [2] sum(|gen-dst| * mask)."""
    si = pl.program_id(2)

    @pl.when(si == 0)
    def _init():
        out_ref[...] = jnp.zeros_like(out_ref)

    n_chan = gen_ref.shape[1]

    # Short unrolled per-channel accumulation: never materializes a
    # (C, tile_rows, 128) f32 temp.  Casts stay in-kernel (native dtype through
    # the DMA -- half the HBM bytes for bf16 inputs).
    abs_sum = None    # (tile_rows, 128) f32: sum_c |gen - dst|
    chan_sum = None   # (tile_rows, 128) f32: sum_c dst
    for c in range(n_chan):
        g = gen_ref[0, c].astype(jnp.float32)
        d = dst_ref[0, c].astype(jnp.float32)
        ad = jnp.abs(g - d)
        abs_sum = ad if abs_sum is None else abs_sum + ad
        chan_sum = d if chan_sum is None else chan_sum + d

    # NOTE: channel sum is accumulated in f32; exact for f32 inputs (the pix2pix
    # case).  Same degenerate behavior as PyTorch if sum(mask) == 0.
    mask = (chan_sum != 3.0).astype(jnp.float32)

    if need_mask:
        # Ragged last block (rows % tile_rows != 0 and/or H*W % 128 != 0):
        # zero out contributions from out-of-range pixels.  jnp.where (not a
        # multiply) so garbage/NaN in the OOB region cannot leak in.
        so = pl.program_id(1)
        row0 = (so * s_inner + si) * tile_rows
        ridx = jax.lax.broadcasted_iota(jnp.int32, (tile_rows, _LANES), 0)
        lidx = jax.lax.broadcasted_iota(jnp.int32, (tile_rows, _LANES), 1)
        flat = (row0 + ridx) * _LANES + lidx
        valid = flat < valid_pixels
        abs_sum = jnp.where(valid, abs_sum, 0.0)
        mask = jnp.where(valid, mask, 0.0)

    # Bit-exact simplification: mask is exactly 0/1 and channel-independent, so
    # sum_c(|d_c| * m) == (sum_c |d_c|) * m.  Saves C multiplies + (C-1) adds
    # per pixel and a second pass over a block-sized temp.
    masked_sum = abs_sum * mask

    folds = tile_rows // acc_rows

    def _fold(x):  # (tile_rows, 128) -> (acc_rows, 128); major-dim split, VPU adds
        if folds == 1:
            return x
        return jnp.sum(x.reshape(folds, acc_rows, _LANES), axis=0)

    out_ref[0, 0, 0] += _fold(abs_sum)
    out_ref[0, 0, 1] += _fold(mask)
    out_ref[0, 0, 2] += _fold(masked_sum)


def custom_loss(gen_images, dst_images, l1_weight=1.0, line_weight=1.0):
    """gen_images, dst_images: (N, C, H, W) float arrays.  Returns scalar f32 loss."""
    assert gen_images.shape == dst_images.shape
    N, C, H, W = gen_images.shape
    HW = H * W
    numel = float(N * C * HW)

    itemsize = max(jnp.dtype(gen_images.dtype).itemsize,
                   jnp.dtype(dst_images.dtype).itemsize)

    # ---- layout: flatten spatial into lane-dense (rows, 128) -------------------
    rows = -(-HW // _LANES)          # ceil(HW / 128)
    hw_pad = rows * _LANES
    pad = hw_pad - HW

    gen_f = gen_images.reshape(N, C, HW)
    dst_f = dst_images.reshape(N, C, HW)
    if pad:
        # Rare path (H*W not a multiple of 128): zero-pad to the next lane
        # multiple.  The in-kernel validity mask zeroes these pixels, so the pad
        # value is irrelevant.
        # TODO(synk): the only remaining HBM copy; could be removed with a flat
        # (N, C, HW) layout + in-kernel relayout if non-128-aligned images matter.
        gen_f = jnp.pad(gen_f, ((0, 0), (0, 0), (0, pad)))
        dst_f = jnp.pad(dst_f, ((0, 0), (0, 0), (0, pad)))

    gen_r = gen_f.reshape(N, C, rows, _LANES)
    dst_r = dst_f.reshape(N, C, rows, _LANES)

    tile_rows = _pick_tile_rows(rows, C, itemsize)
    acc_rows = _ACC_ROWS if tile_rows % _ACC_ROWS == 0 else tile_rows
    s_steps = -(-rows // tile_rows)

    # Second "parallel" grid axis over the spatial dimension so both v7x
    # TensorCores stream HBM even for small / odd N (neutral on single-TC chips).
    s_outer = 2 if s_steps >= 2 else 1
    s_inner = -(-s_steps // s_outer)

    need_mask = (s_outer * s_inner * tile_rows * _LANES) != HW

    kernel = functools.partial(
        _partial_kernel, tile_rows=tile_rows, acc_rows=acc_rows,
        s_inner=s_inner, valid_pixels=HW, need_mask=need_mask)

    last_block = s_steps - 1

    def in_map(n, so, si):
        s = so * s_inner + si
        if s_outer * s_inner != s_steps:
            # Clamp fully out-of-range block indices; the kernel's program-id
            # based validity mask zeroes their contribution.
            s = jnp.minimum(s, last_block)
        return (n, 0, s, 0)

    block_bytes = C * tile_rows * _LANES * itemsize
    if block_bytes < (1 << 20) and s_inner >= 4:
        # Tiny blocks: compute per step is trivial, exposed DMA issue/latency
        # dominates -> triple-buffer the inputs.
        in_specs = [pl.BlockSpec((1, C, tile_rows, _LANES), in_map,
                                 pipeline_mode=pl.Buffered(3)) for _ in range(2)]
    else:
        in_specs = [pl.BlockSpec((1, C, tile_rows, _LANES), in_map)
                    for _ in range(2)]

    out_spec = pl.BlockSpec((1, 1, 3, acc_rows, _LANES),
                            lambda n, so, si: (n, so, 0, 0, 0))

    cost = pl.CostEstimate(
        flops=int(4 * N * C * hw_pad),
        transcendentals=0,
        bytes_accessed=int(2 * N * C * hw_pad * itemsize
                           + N * s_outer * 3 * acc_rows * _LANES * 4),
    )

    partials = pl.pallas_call(
        kernel,
        out_shape=jax.ShapeDtypeStruct((N, s_outer, 3, acc_rows, _LANES),
                                       jnp.float32),
        grid_spec=pltpu.PrefetchScalarGridSpec(
            num_scalar_prefetch=0,
            grid=(N, s_outer, s_inner),
            in_specs=in_specs,
            out_specs=out_spec,
        ),
        compiler_params=pltpu.CompilerParams(
            dimension_semantics=("parallel", "parallel", "arbitrary"),
            vmem_limit_bytes=48 * 1024 * 1024,
        ),
        cost_estimate=cost,
    )(gen_r, dst_r)

    # Tiny epilogue: one cross-lane reduce + the weighted combine (plain JAX).
    sums = jnp.sum(partials, axis=(0, 1, 3, 4))   # (3,)
    l1 = sums[0] / numel
    line = sums[2] / sums[1]
    return l1_weight * l1 + line_weight * line


if __name__ == "__main__":
    key = jax.random.PRNGKey(0)
    k1, k2 = jax.random.split(key)

    N, C, H, W = 2, 4, 16, 16
    gen = jax.random.normal(k1, (N, C, H, W), dtype=jnp.float32)
    dst = jax.random.normal(k2, (N, C, H, W), dtype=jnp.float32)
    # Force some pixels to an exact channel sum of 3.0 (0.75 * 4) so the line
    # mask actually zeroes them out and the masked branch is exercised.
    dst = dst.at[:, :, :4, :4].set(0.75)

    loss = jax.block_until_ready(custom_loss(gen, dst, l1_weight=1.0, line_weight=1.0))

    # Pure-JAX reference (mirrors the PyTorch forward exactly).
    absdiff = jnp.abs(gen - dst)
    l1_ref = jnp.mean(absdiff)
    mask_ref = (jnp.sum(dst, axis=1) != 3.0).astype(jnp.float32)
    line_ref = jnp.sum(absdiff * mask_ref[:, None, :, :]) / jnp.sum(mask_ref)
    total_ref = 1.0 * l1_ref + 1.0 * line_ref

    assert np.allclose(np.asarray(loss), np.asarray(total_ref), rtol=1e-5, atol=1e-5), (
        float(loss), float(total_ref))
    print("KERNEL_OK")
</pallas_src>

<mosaic_0001>
module attributes {stable_mosaic.version = 11 : i64} {
  func.func @_partial_kernel(%arg0: i32, %arg1: i32, %arg2: i32, %arg3: memref<1x4x2x128xf32, #tpu.memory_space<vmem>>, %arg4: memref<1x4x2x128xf32, #tpu.memory_space<vmem>>, %arg5: memref<1x1x3x2x128xf32, #tpu.memory_space<vmem>>) attributes {dimension_semantics = [#tpu.dimension_semantics<parallel>, #tpu.dimension_semantics<parallel>, #tpu.dimension_semantics<arbitrary>], iteration_bounds = array<i64: 2, 1, 1>, scalar_prefetch = 0 : i64, scratch_operands = 0 : i64, tpu.core_type = #tpu.core_type<tc>, window_params = [{transform_indices = @transform_0, window_bounds = array<i64: 1, 4, 2, 128>}, {transform_indices = @transform_1, window_bounds = array<i64: 1, 4, 2, 128>}, {transform_indices = @transform_2, window_bounds = array<i64: 1, 1, 3, 2, 128>}]} {
    %c0_i32 = arith.constant 0 : i32
    %0 = arith.cmpi eq, %arg2, %c0_i32 : i32
    %1 = arith.extui %0 : i1 to i32
    %c0_i32_0 = arith.constant 0 : i32
    %2 = arith.cmpi ne, %1, %c0_i32_0 : i32
    scf.if %2 {
      %cst_59 = arith.constant 0.000000e+00 : f32
      %56 = vector.broadcast %cst_59 : f32 to vector<1x1x3x2x128xf32>
      %c0_60 = arith.constant 0 : index
      %c0_61 = arith.constant 0 : index
      %c0_62 = arith.constant 0 : index
      %c0_63 = arith.constant 0 : index
      %c0_64 = arith.constant 0 : index
      %57 = vector.load %arg5[%c0_60, %c0_61, %c0_62, %c0_63, %c0_64] : memref<1x1x3x2x128xf32, #tpu.memory_space<vmem>>, vector<1x1x3x2x128xf32>
      tpu.vector_store %arg5[%c0_60, %c0_61, %c0_62, %c0_63, %c0_64], %56 {strides = array<i32>} : memref<1x1x3x2x128xf32, #tpu.memory_space<vmem>>, vector<1x1x3x2x128xf32>,
    } else {
    }
    %c0 = arith.constant 0 : index
    %c0_1 = arith.constant 0 : index
    %c0_2 = arith.constant 0 : index
    %c0_3 = arith.constant 0 : index
    %3 = vector.load %arg3[%c0, %c0_1, %c0_2, %c0_3] : memref<1x4x2x128xf32, #tpu.memory_space<vmem>>, vector<1x1x2x128xf32>
    %4 = vector.shape_cast %3 : vector<1x1x2x128xf32> to vector<2x128xf32>
    %c0_4 = arith.constant 0 : index
    %c0_5 = arith.constant 0 : index
    %c0_6 = arith.constant 0 : index
    %c0_7 = arith.constant 0 : index
    %5 = vector.load %arg4[%c0_4, %c0_5, %c0_6, %c0_7] : memref<1x4x2x128xf32, #tpu.memory_space<vmem>>, vector<1x1x2x128xf32>
    %6 = vector.shape_cast %5 : vector<1x1x2x128xf32> to vector<2x128xf32>
    %7 = arith.subf %4, %6 : vector<2x128xf32>
    %8 = math.absf %7 : vector<2x128xf32>
    %c0_8 = arith.constant 0 : index
    %c1 = arith.constant 1 : index
    %c0_9 = arith.constant 0 : index
    %c0_10 = arith.constant 0 : index
    %9 = vector.load %arg3[%c0_8, %c1, %c0_9, %c0_10] : memref<1x4x2x128xf32, #tpu.memory_space<vmem>>, vector<1x1x2x128xf32>
    %10 = vector.shape_cast %9 : vector<1x1x2x128xf32> to vector<2x128xf32>
    %c0_11 = arith.constant 0 : index
    %c1_12 = arith.constant 1 : index
    %c0_13 = arith.constant 0 : index
    %c0_14 = arith.constant 0 : index
    %11 = vector.load %arg4[%c0_11, %c1_12, %c0_13, %c0_14] : memref<1x4x2x128xf32, #tpu.memory_space<vmem>>, vector<1x1x2x128xf32>
    %12 = vector.shape_cast %11 : vector<1x1x2x128xf32> to vector<2x128xf32>
    %13 = arith.subf %10, %12 : vector<2x128xf32>
    %14 = math.absf %13 : vector<2x128xf32>
    %15 = arith.addf %8, %14 : vector<2x128xf32>
    %16 = arith.addf %6, %12 : vector<2x128xf32>
    %c0_15 = arith.constant 0 : index
    %c2 = arith.constant 2 : index
    %c0_16 = arith.constant 0 : index
    %c0_17 = arith.constant 0 : index
    %17 = vector.load %arg3[%c0_15, %c2, %c0_16, %c0_17] : memref<1x4x2x128xf32, #tpu.memory_space<vmem>>, vector<1x1x2x128xf32>
    %18 = vector.shape_cast %17 : vector<1x1x2x128xf32> to vector<2x128xf32>
    %c0_18 = arith.constant 0 : index
    %c2_19 = arith.constant 2 : index
    %c0_20 = arith.constant 0 : index
    %c0_21 = arith.constant 0 : index
    %19 = vector.load %arg4[%c0_18, %c2_19, %c0_20, %c0_21] : memref<1x4x2x128xf32, #tpu.memory_space<vmem>>, vector<1x1x2x128xf32>
    %20 = vector.shape_cast %19 : vector<1x1x2x128xf32> to vector<2x128xf32>
    %21 = arith.subf %18, %20 : vector<2x128xf32>
    %22 = math.absf %21 : vector<2x128xf32>
    %23 = arith.addf %15, %22 : vector<2x128xf32>
    %24 = arith.addf %16, %20 : vector<2x128xf32>
    %c0_22 = arith.constant 0 : index
    %c3 = arith.constant 3 : index
    %c0_23 = arith.constant 0 : index
    %c0_24 = arith.constant 0 : index
    %25 = vector.load %arg3[%c0_22, %c3, %c0_23, %c0_24] : memref<1x4x2x128xf32, #tpu.memory_space<vmem>>, vector<1x1x2x128xf32>
    %26 = vector.shape_cast %25 : vector<1x1x2x128xf32> to vector<2x128xf32>
    %c0_25 = arith.constant 0 : index
    %c3_26 = arith.constant 3 : index
    %c0_27 = arith.constant 0 : index
    %c0_28 = arith.constant 0 : index
    %27 = vector.load %arg4[%c0_25, %c3_26, %c0_27, %c0_28] : memref<1x4x2x128xf32, #tpu.memory_space<vmem>>, vector<1x1x2x128xf32>
    %28 = vector.shape_cast %27 : vector<1x1x2x128xf32> to vector<2x128xf32>
    %29 = arith.subf %26, %28 : vector<2x128xf32>
    %30 = math.absf %29 : vector<2x128xf32>
    %31 = arith.addf %23, %30 : vector<2x128xf32>
    %32 = arith.addf %24, %28 : vector<2x128xf32>
    %cst = arith.constant 3.000000e+00 : f32
    %33 = vector.broadcast %cst : f32 to vector<2x128xf32>
    %34 = arith.cmpf one, %32, %33 : vector<2x128xf32>
    %35 = arith.extui %34 : vector<2x128xi1> to vector<2x128xi32>
    %36 = arith.sitofp %35 : vector<2x128xi32> to vector<2x128xf32>
    %37 = arith.mulf %31, %36 : vector<2x128xf32>
    %c0_29 = arith.constant 0 : index
    %c0_30 = arith.constant 0 : index
    %c0_31 = arith.constant 0 : index
    %c0_32 = arith.constant 0 : index
    %c0_33 = arith.constant 0 : index
    %38 = vector.load %arg5[%c0_29, %c0_30, %c0_31, %c0_32, %c0_33] : memref<1x1x3x2x128xf32, #tpu.memory_space<vmem>>, vector<1x1x1x2x128xf32>
    %39 = vector.shape_cast %38 : vector<1x1x1x2x128xf32> to vector<2x128xf32>
    %40 = arith.addf %39, %31 : vector<2x128xf32>
    %c0_34 = arith.constant 0 : index
    %c0_35 = arith.constant 0 : index
    %c0_36 = arith.constant 0 : index
    %c0_37 = arith.constant 0 : index
    %c0_38 = arith.constant 0 : index
    %41 = vector.load %arg5[%c0_34, %c0_35, %c0_36, %c0_37, %c0_38] : memref<1x1x3x2x128xf32, #tpu.memory_space<vmem>>, vector<1x1x1x2x128xf32>
    %42 = vector.shape_cast %41 : vector<1x1x1x2x128xf32> to vector<2x128xf32>
    %43 = vector.shape_cast %40 : vector<2x128xf32> to vector<1x1x1x2x128xf32>
    tpu.vector_store %arg5[%c0_34, %c0_35, %c0_36, %c0_37, %c0_38], %43 {strides = array<i32>} : memref<1x1x3x2x128xf32, #tpu.memory_space<vmem>>, vector<1x1x1x2x128xf32>,
    %c0_39 = arith.constant 0 : index
    %c0_40 = arith.constant 0 : index
    %c1_41 = arith.constant 1 : index
    %c0_42 = arith.constant 0 : index
    %c0_43 = arith.constant 0 : index
    %44 = vector.load %arg5[%c0_39, %c0_40, %c1_41, %c0_42, %c0_43] : memref<1x1x3x2x128xf32, #tpu.memory_space<vmem>>, vector<1x1x1x2x128xf32>
    %45 = vector.shape_cast %44 : vector<1x1x1x2x128xf32> to vector<2x128xf32>
    %46 = arith.addf %45, %36 : vector<2x128xf32>
    %c0_44 = arith.constant 0 : index
    %c0_45 = arith.constant 0 : index
    %c1_46 = arith.constant 1 : index
    %c0_47 = arith.constant 0 : index
    %c0_48 = arith.constant 0 : index
    %47 = vector.load %arg5[%c0_44, %c0_45, %c1_46, %c0_47, %c0_48] : memref<1x1x3x2x128xf32, #tpu.memory_space<vmem>>, vector<1x1x1x2x128xf32>
    %48 = vector.shape_cast %47 : vector<1x1x1x2x128xf32> to vector<2x128xf32>
    %49 = vector.shape_cast %46 : vector<2x128xf32> to vector<1x1x1x2x128xf32>
    tpu.vector_store %arg5[%c0_44, %c0_45, %c1_46, %c0_47, %c0_48], %49 {strides = array<i32>} : memref<1x1x3x2x128xf32, #tpu.memory_space<vmem>>, vector<1x1x1x2x128xf32>,
    %c0_49 = arith.constant 0 : index
    %c0_50 = arith.constant 0 : index
    %c2_51 = arith.constant 2 : index
    %c0_52 = arith.constant 0 : index
    %c0_53 = arith.constant 0 : index
    %50 = vector.load %arg5[%c0_49, %c0_50, %c2_51, %c0_52, %c0_53] : memref<1x1x3x2x128xf32, #tpu.memory_space<vmem>>, vector<1x1x1x2x128xf32>
    %51 = vector.shape_cast %50 : vector<1x1x1x2x128xf32> to vector<2x128xf32>
    %52 = arith.addf %51, %37 : vector<2x128xf32>
    %c0_54 = arith.constant 0 : index
    %c0_55 = arith.constant 0 : index
    %c2_56 = arith.constant 2 : index
    %c0_57 = arith.constant 0 : index
    %c0_58 = arith.constant 0 : index
    %53 = vector.load %arg5[%c0_54, %c0_55, %c2_56, %c0_57, %c0_58] : memref<1x1x3x2x128xf32, #tpu.memory_space<vmem>>, vector<1x1x1x2x128xf32>
    %54 = vector.shape_cast %53 : vector<1x1x1x2x128xf32> to vector<2x128xf32>
    %55 = vector.shape_cast %52 : vector<2x128xf32> to vector<1x1x1x2x128xf32>
    tpu.vector_store %arg5[%c0_54, %c0_55, %c2_56, %c0_57, %c0_58], %55 {strides = array<i32>} : memref<1x1x3x2x128xf32, #tpu.memory_space<vmem>>, vector<1x1x1x2x128xf32>,
    return
  }
  func.func @transform_0(%arg0: i32, %arg1: i32, %arg2: i32) -> (i32, i32, i32, i32) {
    %c1_i32 = arith.constant 1 : i32
    %0 = arith.muli %arg1, %c1_i32 : i32
    %1 = arith.addi %0, %arg2 : i32
    %c0_i32 = arith.constant 0 : i32
    %c0_i32_0 = arith.constant 0 : i32
    %c0_i32_1 = arith.constant 0 : i32
    return %arg0, %c0_i32, %1, %c0_i32_0 : i32, i32, i32, i32
  }
  func.func @transform_1(%arg0: i32, %arg1: i32, %arg2: i32) -> (i32, i32, i32, i32) {
    %c1_i32 = arith.constant 1 : i32
    %0 = arith.muli %arg1, %c1_i32 : i32
    %1 = arith.addi %0, %arg2 : i32
    %c0_i32 = arith.constant 0 : i32
    %c0_i32_0 = arith.constant 0 : i32
    %c0_i32_1 = arith.constant 0 : i32
    return %arg0, %c0_i32, %1, %c0_i32_0 : i32, i32, i32, i32
  }
  func.func @transform_2(%arg0: i32, %arg1: i32, %arg2: i32) -> (i32, i32, i32, i32, i32) {
    %c0_i32 = arith.constant 0 : i32
    %c0_i32_0 = arith.constant 0 : i32
    %c0_i32_1 = arith.constant 0 : i32
    %c0_i32_2 = arith.constant 0 : i32
    return %arg0, %arg1, %c0_i32, %c0_i32_0, %c0_i32_1 : i32, i32, i32, i32, i32
  }
}

</mosaic_0001>

<bundles_post_ra>
// kernel: tpu_custom_call.1
= control target key start
LH: loop header
LB: loop body
LE: loop exit
PB: predicated region body
PF: predicated region fallthrough
CT: control target
= control target key end

     0   :  { %7 = vsyncpa [#allocation3], 0  ;;  %s850_s0 = inlined_call_operand.hbm [shape: f32[2,4,2,128], index: 0, kind: input, shape index: {}]   ;;  %s851_s1 = inlined_call_operand.hbm [shape: f32[2,4,2,128], index: 1, kind: input, shape index: {}]   ;;  %s852_s2 = inlined_call_operand.hbm [shape: f32[2,1,3,2,128], index: 2, kind: output, shape index: {}]  }
   0x1   :  { %9 = vsyncpa [#allocation3 + $0x1], 0 }
   0x2   :  { %10 = vsyncpa [#allocation6], 0 }
   0x3   :  { %12 = vsyncpa [#allocation6 + $0x1], 0 }
   0x4   :  { %13 = vsyncpa [#allocation4], 0 }
   0x5   :  { %15 = vsyncpa [#allocation4 + $0x1], 0  ;;  %s696_s9 = smov 0   ;;  %s698_s10 = smov 0  }
   0x6   :  { %s700_s11 = smov 0   ;;  %s702_s12 = smov 0  }
   0x7   :  { %s704_s13 = smov 0   ;;  %s706_s14 = smov 0  }
   0x8 LB: > { %s425_s15 = sadd.s32 4294967295, %s674_s14   ;;  %s426_s16 = sadd.s32 4294967294, %s674_s14   ;;  %s674_s14 = sphi %s706_s14, %s21_s14   ;;  %s670_s13 = sphi %s704_s13, %s862_s13   ;;  %s666_s12 = sphi %s702_s12, %s861_s12   ;;  %s662_s11 = sphi %s700_s11, %s860_s11   ;;  %s658_s10 = sphi %s698_s10, %s859_s10   ;;  %s654_s9 = sphi %s696_s9, %s858_s9  }
   0x9   : > { %s40_s17 = sadd.s32 1, %s670_s13  ;;  %s51_s18 = sadd.s32 1, %s662_s11 }
   0xa   : > { %p42_p0 = scmp.ge.s32.totalorder %s40_s17, 2  ;;  %p58_p1 = scmp.ne.s32.totalorder %s662_s11, %s658_s10 }
   0xb   : > { %p59_p2 = scmp.eq.s32.totalorder %s674_s14, 0  ;;  %p64_p3 = scmp.ne.s32.totalorder %s658_s10, %s654_s9 }
   0xc   : > { %s864_s17 = smov (%p42_p0, %s40_s17), 0  ;;  %p65_p5 = scmp.eq.s32.totalorder %s425_s15, 0 }
   0xd   : > { %p737_p4 = por %p59_p2, %p58_p1  ;;  %s46_s20 = ssub.s32 %s670_s13, %s864_s17 }
   0xe   : > { %p120_p6 = scmp.eq.s32.totalorder %s425_s15, 1  ;;  %p49_p7 = scmp.eq.s32.totalorder %s46_s20, 0 }
   0xf   : > { %p743_p8 = por %p65_p5, %p64_p3  ;;  %p126_p10 = scmp.eq.s32.totalorder %s426_s16, 1 }
  0x10   : > { %p747_p9 = por %p120_p6, %p58_p1  ;;  %p428_p12 = scmp.ge.s32.totalorder %s674_s14, 2 }
  0x11   : > { %s752_s23 = scalar_select %p49_p7, %s662_s11, %s51_s18  }
  0x12   : > { %p754_p11 = por %p126_p10, %p64_p3  ;;  %p473_p13 = scmp.lt.s32.totalorder %s674_s14, 2 }
  0x13   : > { %s761_s25 = sand.u32 1, %s662_s11   ;;  %s452_s27 = sshll.u32 %s670_s13, 3 }
  0x14   : > { %s429_s26 = sshll.u32 %s761_s25, 3  ;;  %s157_s30 = scalar_lea.hbm %s850_s0, %s452_s27 }
  0x15   : > { %s150_s3 = scalar_lea.vmem [#allocation2], %s429_s26  ;;  %s158_s5 = sshll.u32 %s157_s30, 4  ;;  %s159_s5 = int_to_ptr.hbm [resolvable:$true] %s158_s5 }
  0x16   : > { %s160_s4 = sshll.u32 %s150_s3, 4  ;;  %p770_p0 = pnand %p473_p13, %p737_p4  ;;  %s161_s4 = int_to_ptr.vmem [resolvable:$true] %s160_s4 }
  0x17   : > { %p435_p1 = scmp.ge.s32.totalorder %s674_s14, 1  ;;  %s147_s7 = scalar_lea.sflag [#allocation3], %s761_s25 }
  0x18   : > { %s676_s8 = smov 32   ;;  %s677_s15 = smov 2  }
  0x19   : > { %465 = dma.hbm_to_vmem [thread:$0]  (!%p770_p0), %s159_s5, 128, %s161_s4, %s147_s7, %s676_s8, %s676_s8, %s677_s15  }
  0x1a   : > { %p192_p2 = scmp.lt.s32.totalorder %s674_s14, 3  ;;  %s181_s20 = scalar_lea.hbm %s851_s1, %s452_s27 }
  0x1b   : > { %s182_s28 = sshll.u32 %s181_s20, 4  ;;  %s174_s19 = scalar_lea.vmem [#allocation5], %s429_s26  ;;  %s183_s28 = int_to_ptr.hbm [resolvable:$true] %s182_s28 }
  0x1c   : > { %p193_p3 = pnand %p435_p1, %p192_p2  ;;  %s184_s29 = sshll.u32 %s174_s19, 4  ;;  %s185_s29 = int_to_ptr.vmem [resolvable:$true] %s184_s29 }
  0x1d   : > { %s171_s30 = scalar_lea.sflag [#allocation6], %s761_s25  ;;  %s786_s3 = sand.u32 (!%p193_p3), 1, %s658_s10  }
  0x1e   : > { %468 = dma.hbm_to_vmem [thread:$0]  (!%p770_p0), %s183_s28, 128, %s185_s29, %s171_s30, %s676_s8, %s676_s8, %s677_s15  }
  0x1f   : > { %196 = sbr.rel (%p193_p3) target bundleno = 59 (0x3b), region = 28  ;;  %s436_s4 = sshll.u32 (!%p193_p3), %s786_s3, 3 }
  0x20   : > { %s199_s5 = scalar_lea.sflag (!%p193_p3), [#allocation3], %s786_s3  ;;  %s202_s7 = scalar_lea.vmem (!%p193_p3), [#allocation2], %s436_s4 }
  0x24   : > { %641 = dma.done.wait (%p743_p8), %s199_s5, 128  }
  0x25   : > { %643 = vsyncadd (%p743_p8), %s199_s5, 4294967168  ;;  %s209_s25 = scalar_lea.sflag [#allocation6], %s786_s3  ;;  %s212_s26 = scalar_lea.vmem [#allocation5], %s436_s4 }
  0x26   : > { %645 = dma.done.wait (%p743_p8), %s209_s25, 128  }
  0x27   : > { %647 = vsyncadd (%p743_p8), %s209_s25, 4294967168  ;;  %s454_s27 = smul.u32 6, %s786_s3  ;;  %v678_v0 = vmov 0.0   ;;  %v248_v1 = vld [vmem:[%s202_s7] sm:$0x3]  ;;  %s292_s20 = scalar_lea.sflag [#allocation4], %s786_s3 }
  0x28   : > { %v249_v2 = vld [vmem:[%s212_s26] sm:$0x3]  ;;  %v438_v3 = vld [vmem:[%s202_s7 + $0x2] sm:$0x3]  ;;  %v439_v5 = vld [vmem:[%s212_s26 + $0x2] sm:$0x3] }
  0x29   : > { %s800_s6 = scalar_lea.vmem [#allocation7], %s454_s27  ;;  %v250_v4 = vsub.f32 %v248_v1, %v249_v2  ;;  %v440_v6 = vld [vmem:[%s202_s7 + $0x4] sm:$0x3]  ;;  %v441_v7 = vld [vmem:[%s212_s26 + $0x4] sm:$0x3]  ;;  %v256_v8 = vsub.f32 %v438_v3, %v439_v5  ;;  %v259_v9 = vadd.f32 %v439_v5, %v249_v2  ;;  %s455_s21 = smul.u32 6, %s666_s12 }
  0x2a   : > { %245 = vst [vmem:[%s800_s6] sm:$0x3] %v678_v0  ;;  %v264_v10 = vsub.f32 %v440_v6, %v441_v7  ;;  %v442_v11 = vld [vmem:[%s202_s7 + $0x6] sm:$0x3]  ;;  %v443_v12 = vld [vmem:[%s212_s26 + $0x6] sm:$0x3]  ;;  %s306_s12 = sshll.u32 %s800_s6, 4  ;;  %s307_s12 = int_to_ptr.vmem [resolvable:$true] %s306_s12 }
  0x2b   : > { %246 = vst [vmem:[%s800_s6 + $0x2] sm:$0x3] %v678_v0  ;;  %v251_v13 = vand.u32 2147483647, %v250_v4  ;;  %v272_v14 = vsub.f32 %v442_v11, %v443_v12  ;;  %v257_v15 = vand.u32 2147483647, %v256_v8  ;;  %v267_v17 = vadd.f32 %v441_v7, %v259_v9  ;;  %s305_s16 = scalar_lea.hbm %s852_s2, %s455_s21 }
  0x2c   : > { %247 = vst [vmem:[%s800_s6 + $0x4] sm:$0x3] %v678_v0  ;;  %v265_v16 = vand.u32 2147483647, %v264_v10  ;;  %s308_s18 = sshll.u32 %s305_s16, 4  ;;  %s608_s4 = scalar_lea.hbm %s852_s2, 12  ;;  %s309_s18 = int_to_ptr.hbm [resolvable:$true] %s308_s18 }
  0x2d   : > { %v258_v18 = vadd.f32 %v257_v15, %v251_v13  ;;  %v273_v19 = vand.u32 2147483647, %v272_v14  ;;  %v275_v20 = vadd.f32 %v443_v12, %v267_v17  ;;  %s602_s28 = sshra.s32 %s309_s18, 4  ;;  %s603_s28 = int_to_ptr.hbm [resolvable:$true] %s602_s28 }
  0x2e   : > { %s604_s19 = scalar_lea.hbm %s603_s28, 6  ;;  %p609_p7 = scmp.lt.s32.totalorder %s603_s28, %s852_s2 }
  0x2f   : > { %v266_v22 = vadd.f32 %v265_v16, %v258_v18  ;;  %vm276_vm0 = vcmp.ne.f32.partialorder %v275_v20, 3.0  ;;  %p605_p4 = scmp.ne.s32.totalorder %s603_s28, %s604_s19  ;;  %p610_p8 = scmp.lt.s32.totalorder %s608_s4, %s604_s19 }
  0x30   : > { %v444_v23 = vsel %vm276_vm0, 1.0, %v678_v0 }
  0x31   : > { %v280_v24 = vld [vmem:[%s800_s6] sm:$0x3]  ;;  %v274_v25 = vadd.f32 %v273_v19, %v266_v22  ;;  %p606_p5 = pnand %p605_p4, %p747_p9  ;;  %p611_p10 = por %p610_p8, %p609_p7 }
  0x32   : > { %v445_v21 = vld [vmem:[%s800_s6 + $0x2] sm:$0x3] }
  0x33   : > { %v285_v26 = vadd.f32 %v445_v21, %v444_v23  ;;  %v447_v27 = vld [vmem:[%s800_s6 + $0x4] sm:$0x3]  ;;  %v279_v28 = vmul.f32 %v444_v23, %v274_v25  ;;  %v281_v29 = vadd.f32 %v280_v24, %v274_v25  ;;  %p607_p6 = pneg %p606_p5 }
  0x35   : > { %446 = vst [vmem:[%s800_s6 + $0x2] sm:$0x3] %v285_v26  ;;  %v289_v30 = vadd.f32 %v447_v27, %v279_v28  ;;  %p612_p13 = pnand %p611_p10, %p607_p6 }
  0x36   : > { %282 = vst [vmem:[%s800_s6] sm:$0x3] %v281_v29 }
  0x37   : > { %448 = vst [vmem:[%s800_s6 + $0x4] sm:$0x3] %v289_v30 }
  0x38   : > { %615 = shalt.err (!%p612_p13)
}
  0x39   : > { %s679_s3 = smov 32   ;;  %s680_s25 = smov 2  }
  0x3a   : > { %460 = dma.vmem_to_hbm [thread:$0]  (%p747_p9), %s307_s12, 96, %s309_s18, %s292_s20, %s679_s3, %s679_s3, %s680_s25  }
  0x3b PF: > { %s323_s26 = sand.u32 1, %s654_s9   ;;  %p470_p0 = pnand %p428_p12, %p754_p11 }
  0x3c   : > { %s324_s27 = scalar_lea.sflag [#allocation4], %s323_s26 }
  0x3d   : > { %p471_p1 = pneg %p470_p0 }
  0x3f   : > { %649 = dma.done.wait (%p471_p1), %s324_s27, 96  }
  0x40   : > { %651 = vsyncadd (%p471_p1), %s324_s27, 4294967200  ;;  %s21_s14 = sadd.s32 1, %s674_s14   ;;  %s858_s9 = smov %s658_s10 }
  0x41   : > { %p18_p2 = scmp.ge.s32.totalorder %s21_s14, 4   ;;  %s859_s10 = smov %s662_s11 }
  0x42   : > { %s860_s11 = smov %s752_s23  ;;  %s861_s12 = smov %s670_s13 }
  0x43   : > { %s862_s13 = smov %s864_s17  ;;  %20 = sbr.rel (!%p18_p2) target bundleno = 8 (0x8), region = 98 }
  0x48   :  { %330 = vsyncpa [#allocation3], 1 }
  0x49   :  { %332 = vsyncpa [#allocation3 + $0x1], 1 }
  0x4a   :  { %333 = vsyncpa [#allocation6], 1 }
  0x4b   :  { %335 = vsyncpa [#allocation6 + $0x1], 1 }
  0x4c   :  { %336 = vsyncpa [#allocation4], 1 }
  0x4d   :  { %338 = vsyncpa [#allocation4 + $0x1], 1 }

</bundles_post_ra>
